<compile_context>
chip_gen: v5e
topology: v5e:2x2
jax: 0.10.0
libtpu: 0.0.40
codegen_flags: <defaults>
</compile_context>

<pallas_src>
import functools

import numpy as np
import jax
import jax.numpy as jnp
from jax import lax
from jax.experimental import pallas as pl
from jax.experimental.pallas import tpu as pltpu


# ---------------------------------------------------------------------------
# Helpers
# ---------------------------------------------------------------------------
def _round_up(x, m):
    return ((x + m - 1) // m) * m


def _pick_divisor_tile(dim, target, align):
    """Largest multiple of `align` <= target dividing `dim`, else full dim."""
    if dim <= target:
        return dim
    t = (target // align) * align
    while t >= align:
        if dim % t == 0:
            return t
        t -= align
    return dim


def _heads_per_group(num_heads, head_dim):
    """Largest divisor of H whose group width (hpg * D) stays <= 128 lanes."""
    best = 1
    for cand in range(1, num_heads + 1):
        if num_heads % cand == 0 and cand * head_dim <= 128:
            best = cand
    return best


# ---------------------------------------------------------------------------
# Projection matmul: out = x @ w_t (+ b), full-K blocks, bf16 MXU / f32 acc.
# ---------------------------------------------------------------------------
def _matmul_kernel(x_ref, w_ref, o_ref):
    o_ref[...] = jnp.dot(
        x_ref[...], w_ref[...],
        preferred_element_type=jnp.float32).astype(o_ref.dtype)


def _matmul_bias_kernel(x_ref, w_ref, b_ref, o_ref):
    acc = jnp.dot(x_ref[...], w_ref[...], preferred_element_type=jnp.float32)
    o_ref[...] = (acc + b_ref[...].astype(jnp.float32)).astype(o_ref.dtype)


def pallas_matmul(x, w_t, b=None, out_dtype=None):
    """x: (M, K); w_t: (K, Nout) pre-transposed bf16 weight; b: (Nout,) or None."""
    out_dtype = out_dtype if out_dtype is not None else x.dtype
    x = x.astype(jnp.bfloat16)
    M, K = x.shape
    K2, Nout = w_t.shape
    assert K == K2

    # Row tile: 512-class, multiple of 8; pad M up instead of a full-dim fallback.
    tm = min(512, _round_up(M, 8))
    Mp = _round_up(M, tm)
    if Mp != M:
        x = jnp.pad(x, ((0, Mp - M), (0, 0)))
    tn = _pick_divisor_tile(Nout, 512, 128)
    grid = (Mp // tm, Nout // tn)

    x_spec = pl.BlockSpec((tm, K), lambda i, j: (i, 0))
    w_spec = pl.BlockSpec((K, tn), lambda i, j: (0, j))
    o_spec = pl.BlockSpec((tm, tn), lambda i, j: (i, j))
    out_shape = jax.ShapeDtypeStruct((Mp, Nout), out_dtype)

    ob = jnp.dtype(out_dtype).itemsize
    vmem = 2 * (tm * K * 2 + K * tn * 2 + tm * tn * ob) + tm * tn * 4 + (2 << 20)
    vmem = int(min(max(vmem, 8 << 20), 64 << 20))
    cparams = pltpu.CompilerParams(
        dimension_semantics=("parallel", "parallel"),
        vmem_limit_bytes=vmem)

    if b is None:
        out = pl.pallas_call(
            _matmul_kernel, grid=grid,
            in_specs=[x_spec, w_spec], out_specs=o_spec,
            out_shape=out_shape, compiler_params=cparams,
        )(x, w_t)
    else:
        b2 = b.reshape(1, Nout)
        b_spec = pl.BlockSpec((1, tn), lambda i, j: (0, j))
        out = pl.pallas_call(
            _matmul_bias_kernel, grid=grid,
            in_specs=[x_spec, w_spec, b_spec], out_specs=o_spec,
            out_shape=out_shape, compiler_params=cparams,
        )(x, w_t, b2)

    return out[:M] if Mp != M else out


# ---------------------------------------------------------------------------
# Attention core: grid (B, query-tiles); qkv slab resident per batch element.
# ---------------------------------------------------------------------------
def _attention_kernel(qkv_ref, o_ref, *, num_heads, head_dim, heads_per_grp, tq):
    # qkv_ref: (N, 3E) bf16, channels [q | k | v] head-major, q pre-scaled.
    # o_ref:   (tq, E), written in 'b n (h d)' layout.
    E = num_heads * head_dim
    N = qkv_ref.shape[0]
    if tq < N:
        qs = pl.multiple_of(pl.program_id(1) * tq, tq)
    else:
        qs = 0

    gw = heads_per_grp * head_dim
    for g in range(num_heads // heads_per_grp):      # static unroll over head groups
        glo = g * gw
        # Lane-grouped loads (width >= 128 when D allows -> unmasked vld/vst).
        qg = qkv_ref[pl.ds(qs, tq), glo:glo + gw]            # (tq, gw) bf16
        kg = qkv_ref[:, E + glo:E + glo + gw]                # (N, gw)  bf16
        vg = qkv_ref[:, 2 * E + glo:2 * E + glo + gw]        # (N, gw)  bf16

        outs = []
        for hh in range(heads_per_grp):
            lo = hh * head_dim
            q = qg[:, lo:lo + head_dim]
            k = kg[:, lo:lo + head_dim]
            v = vg[:, lo:lo + head_dim]

            # energy = (q*scale) @ k^T, contracting D of both (no k transpose).
            energy = lax.dot_general(
                q, k, dimension_numbers=(((1,), (1,)), ((), ())),
                preferred_element_type=jnp.float32)          # (tq, N) f32

            # Numerically stable softmax in f32; EUP approx reciprocal.
            energy = energy - jnp.max(energy, axis=-1, keepdims=True)
            p = jnp.exp(energy)
            inv = pl.reciprocal(jnp.sum(p, axis=-1, keepdims=True), approx=True)
            att = (p * inv).astype(v.dtype)                  # cast only at MXU boundary

            outs.append(jnp.dot(att, v, preferred_element_type=jnp.float32))

        grp = outs[0] if len(outs) == 1 else jnp.concatenate(outs, axis=-1)
        o_ref[:, glo:glo + gw] = grp.astype(o_ref.dtype)     # incremental store
    # TODO(synk): boolean attention-mask fill (energy.masked_fill) not implemented.
    # TODO(synk): att_drop treated as eval-mode identity (inference forward).


def _mha_attention(qkv, num_heads, head_dim, out_dtype):
    B, N, threeE = qkv.shape
    E = num_heads * head_dim
    tq = _pick_divisor_tile(N, 256, 8)           # query tile (>=128-256 class)
    hpg = _heads_per_group(num_heads, head_dim)
    grid = (B, N // tq)

    vmem = (2 * N * threeE * 2                    # qkv block (bf16), double-buffered
            + 2 * tq * E * jnp.dtype(out_dtype).itemsize
            + 8 * tq * N * 4                      # energy / softmax temporaries
            + (2 << 20))
    vmem = int(min(max(vmem, 8 << 20), 64 << 20))

    kernel = functools.partial(
        _attention_kernel, num_heads=num_heads, head_dim=head_dim,
        heads_per_grp=hpg, tq=tq)

    return pl.pallas_call(
        kernel,
        grid=grid,
        in_specs=[pl.BlockSpec((None, N, threeE), lambda b, qi: (b, 0, 0))],
        out_specs=pl.BlockSpec((None, tq, E), lambda b, qi: (b, qi, 0)),
        out_shape=jax.ShapeDtypeStruct((B, N, E), out_dtype),
        compiler_params=pltpu.CompilerParams(
            dimension_semantics=("parallel", "parallel"),
            vmem_limit_bytes=vmem),
    )(qkv)


# ---------------------------------------------------------------------------
# One-time weight preparation (done at weight-load time, outside jit).
# ---------------------------------------------------------------------------
def prepare_mha_weights(w_qkv, w_proj, b_proj, num_heads):
    """w_qkv: (3E, E), w_proj: (E, E), b_proj: (E,) in PyTorch (out, in) layout."""
    E = w_proj.shape[0]
    D = E // num_heads
    # PyTorch qkv channel c = h*(3D) + d*3 + s  ->  packed channel c' = s*E + h*D + d.
    perm = np.transpose(
        np.arange(3 * E).reshape(num_heads, D, 3), (2, 0, 1)).reshape(3 * E)
    w_packed = jnp.asarray(w_qkv)[perm]                       # (3E, E)
    scale = 1.0 / (float(E) ** 0.5)                           # module uses sqrt(emb_size)
    w_packed = w_packed.at[:E].multiply(scale)                # fold scale into q rows
    w_qkv_t = jnp.transpose(w_packed).astype(jnp.bfloat16)    # (E, 3E)
    w_proj_t = jnp.transpose(jnp.asarray(w_proj)).astype(jnp.bfloat16)  # (E, E)
    return w_qkv_t, w_proj_t, jnp.asarray(b_proj, jnp.float32)


# ---------------------------------------------------------------------------
# Module forward
# ---------------------------------------------------------------------------
def multi_head_attention(x, w_qkv_t, w_proj_t, b_proj, num_heads):
    """x: (B, N, E); weights from prepare_mha_weights."""
    B, N, E = x.shape
    H = num_heads
    D = E // H

    # qkv = x @ W_qkv^T -> (B, N, 3E) bf16, already laid out as [q | k | v].
    qkv = pallas_matmul(x.reshape(B * N, E), w_qkv_t, out_dtype=jnp.bfloat16)
    qkv = qkv.reshape(B, N, 3 * E)

    # Attention, output directly in 'b n (h d)' layout (bf16 for the next MXU).
    attn = _mha_attention(qkv, H, D, out_dtype=jnp.bfloat16)

    # projection: attn @ W_proj^T + b_proj.
    out = pallas_matmul(attn.reshape(B * N, E), w_proj_t, b=b_proj,
                        out_dtype=x.dtype)
    return out.reshape(B, N, E)


# ---------------------------------------------------------------------------
# Pure-JAX f32 reference (original module semantics) for a sanity check
# ---------------------------------------------------------------------------
def reference_mha(x, w_qkv, w_proj, b_proj, num_heads):
    B, N, E = x.shape
    H = num_heads
    D = E // H
    qkv = x @ w_qkv.T
    qkv = qkv.reshape(B, N, H, D, 3)
    qkv = jnp.transpose(qkv, (4, 0, 2, 1, 3))
    q, k, v = qkv[0], qkv[1], qkv[2]
    energy = jnp.einsum("bhqd,bhkd->bhqk", q, k) / (float(E) ** 0.5)
    att = jax.nn.softmax(energy, axis=-1)
    out = jnp.einsum("bhal,bhlv->bhav", att, v)
    out = jnp.transpose(out, (0, 2, 1, 3)).reshape(B, N, E)
    return out @ w_proj.T + b_proj


if __name__ == "__main__":
    B, N, E, H = 2, 8, 32, 2  # batch=2, seq=8, emb_size=32, num_heads=2

    key = jax.random.PRNGKey(0)
    kx, kqkv, kwp, kbp = jax.random.split(key, 4)
    x = jax.random.normal(kx, (B, N, E), dtype=jnp.float32)
    w_qkv = jax.random.normal(kqkv, (3 * E, E), dtype=jnp.float32) * 0.05
    w_proj = jax.random.normal(kwp, (E, E), dtype=jnp.float32) * 0.05
    b_proj = jax.random.normal(kbp, (E,), dtype=jnp.float32) * 0.05

    # Weight permute / scale-fold / transpose / bf16 cast hoisted out of jit.
    w_qkv_t, w_proj_t, b = prepare_mha_weights(w_qkv, w_proj, b_proj, H)

    fwd = jax.jit(multi_head_attention, static_argnums=4)
    out = jax.block_until_ready(fwd(x, w_qkv_t, w_proj_t, b, H))

    ref = reference_mha(x, w_qkv, w_proj, b_proj, H)
    assert out.shape == (B, N, E)
    # bf16 MXU operands + EUP approx reciprocal -> loose tolerance vs f32 ref.
    assert jnp.allclose(out, ref, atol=2e-2, rtol=2e-2), "mismatch vs reference"

    print("KERNEL_OK")
</pallas_src>

<mosaic_0001>
module attributes {stable_mosaic.version = 11 : i64} {
  func.func @_matmul_kernel(%arg0: i32, %arg1: i32, %arg2: memref<16x32xbf16, #tpu.memory_space<vmem>>, %arg3: memref<32x96xbf16, #tpu.memory_space<vmem>>, %arg4: memref<16x96xbf16, #tpu.memory_space<vmem>>) attributes {dimension_semantics = [#tpu.dimension_semantics<parallel>, #tpu.dimension_semantics<parallel>], iteration_bounds = array<i64: 1, 1>, scalar_prefetch = 0 : i64, scratch_operands = 0 : i64, tpu.core_type = #tpu.core_type<tc>, window_params = [{transform_indices = @transform_0, window_bounds = array<i64: 16, 32>}, {transform_indices = @transform_1, window_bounds = array<i64: 32, 96>}, {transform_indices = @transform_2, window_bounds = array<i64: 16, 96>}]} {
    %c0 = arith.constant 0 : index
    %c0_0 = arith.constant 0 : index
    %0 = vector.load %arg2[%c0, %c0_0] : memref<16x32xbf16, #tpu.memory_space<vmem>>, vector<16x32xbf16>
    %c0_1 = arith.constant 0 : index
    %c0_2 = arith.constant 0 : index
    %1 = vector.load %arg3[%c0_1, %c0_2] : memref<32x96xbf16, #tpu.memory_space<vmem>>, vector<32x96xbf16>
    %cst = arith.constant dense<0.000000e+00> : vector<16x96xf32>
    %2 = tpu.matmul %0, %1, %cst {dimension_numbers = #tpu.dot_dimension_numbers<[1], [0], [0], [1], [0, 0, 1, 1], [], []>} : vector<16x32xbf16>, vector<32x96xbf16>, vector<16x96xf32> -> vector<16x96xf32>
    %3 = arith.truncf %2 : vector<16x96xf32> to vector<16x96xbf16>
    %c0_3 = arith.constant 0 : index
    %c0_4 = arith.constant 0 : index
    %4 = vector.load %arg4[%c0_3, %c0_4] : memref<16x96xbf16, #tpu.memory_space<vmem>>, vector<16x96xbf16>
    tpu.vector_store %arg4[%c0_3, %c0_4], %3 {strides = array<i32>} : memref<16x96xbf16, #tpu.memory_space<vmem>>, vector<16x96xbf16>,
    return
  }
  func.func @transform_0(%arg0: i32, %arg1: i32) -> (i32, i32) {
    %c0_i32 = arith.constant 0 : i32
    %c0_i32_0 = arith.constant 0 : i32
    return %arg0, %c0_i32 : i32, i32
  }
  func.func @transform_1(%arg0: i32, %arg1: i32) -> (i32, i32) {
    %c0_i32 = arith.constant 0 : i32
    %c0_i32_0 = arith.constant 0 : i32
    return %c0_i32, %arg1 : i32, i32
  }
  func.func @transform_2(%arg0: i32, %arg1: i32) -> (i32, i32) {
    %c0_i32 = arith.constant 0 : i32
    return %arg0, %arg1 : i32, i32
  }
}

module attributes {stable_mosaic.version = 11 : i64} {
  func.func @_attention_kernel(%arg0: i32, %arg1: i32, %arg2: memref<1x8x96xbf16, #tpu.memory_space<vmem>>, %arg3: memref<1x8x32xbf16, #tpu.memory_space<vmem>>) attributes {dimension_semantics = [#tpu.dimension_semantics<parallel>, #tpu.dimension_semantics<parallel>], iteration_bounds = array<i64: 2, 1>, scalar_prefetch = 0 : i64, scratch_operands = 0 : i64, tpu.core_type = #tpu.core_type<tc>, window_params = [{transform_indices = @transform_0, window_bounds = array<i64: 1, 8, 96>}, {transform_indices = @transform_1, window_bounds = array<i64: 1, 8, 32>}]} {
    %c0 = arith.constant 0 : index
    %c0_0 = arith.constant 0 : index
    %c0_1 = arith.constant 0 : index
    %0 = vector.load %arg2[%c0, %c0_0, %c0_1] : memref<1x8x96xbf16, #tpu.memory_space<vmem>>, vector<1x8x32xbf16>
    %1 = vector.shape_cast %0 : vector<1x8x32xbf16> to vector<8x32xbf16>
    %c0_2 = arith.constant 0 : index
    %c0_3 = arith.constant 0 : index
    %c32 = arith.constant 32 : index
    %2 = vector.load %arg2[%c0_2, %c0_3, %c32] : memref<1x8x96xbf16, #tpu.memory_space<vmem>>, vector<1x8x32xbf16>
    %3 = vector.shape_cast %2 : vector<1x8x32xbf16> to vector<8x32xbf16>
    %c0_4 = arith.constant 0 : index
    %c0_5 = arith.constant 0 : index
    %c64 = arith.constant 64 : index
    %4 = vector.load %arg2[%c0_4, %c0_5, %c64] : memref<1x8x96xbf16, #tpu.memory_space<vmem>>, vector<1x8x32xbf16>
    %5 = vector.shape_cast %4 : vector<1x8x32xbf16> to vector<8x32xbf16>
    %6 = vector.extract_strided_slice %1 {offsets = [0, 0], sizes = [8, 16], strides = [1, 1]} : vector<8x32xbf16> to vector<8x16xbf16>
    %7 = vector.extract_strided_slice %3 {offsets = [0, 0], sizes = [8, 16], strides = [1, 1]} : vector<8x32xbf16> to vector<8x16xbf16>
    %8 = vector.extract_strided_slice %5 {offsets = [0, 0], sizes = [8, 16], strides = [1, 1]} : vector<8x32xbf16> to vector<8x16xbf16>
    %cst = arith.constant dense<0.000000e+00> : vector<8x8xf32>
    %9 = tpu.matmul %6, %7, %cst {dimension_numbers = #tpu.dot_dimension_numbers<[1], [1], [0], [0], [0, 0, 1, 0], [], []>} : vector<8x16xbf16>, vector<8x16xbf16>, vector<8x8xf32> -> vector<8x8xf32>
    %cst_6 = arith.constant dense<0xFF800000> : vector<8xf32>
    %10 = vector.multi_reduction <maximumf>, %9, %cst_6 [1] : vector<8x8xf32> to vector<8xf32>
    %11 = vector.shape_cast %10 : vector<8xf32> to vector<8x1xf32>
    %12 = vector.broadcast %11 : vector<8x1xf32> to vector<8x8xf32>
    %13 = arith.subf %9, %12 : vector<8x8xf32>
    %14 = math.exp %13 : vector<8x8xf32>
    %cst_7 = arith.constant dense<0.000000e+00> : vector<8xf32>
    %15 = vector.multi_reduction <add>, %14, %cst_7 [1] : vector<8x8xf32> to vector<8xf32>
    %16 = vector.shape_cast %15 : vector<8xf32> to vector<8x1xf32>
    %17 = tpu.reciprocal %16 {approx = true} : vector<8x1xf32> -> vector<8x1xf32>
    %18 = vector.broadcast %17 : vector<8x1xf32> to vector<8x8xf32>
    %19 = arith.mulf %14, %18 : vector<8x8xf32>
    %20 = arith.truncf %19 : vector<8x8xf32> to vector<8x8xbf16>
    %cst_8 = arith.constant dense<0.000000e+00> : vector<8x16xf32>
    %21 = tpu.matmul %20, %8, %cst_8 {dimension_numbers = #tpu.dot_dimension_numbers<[1], [0], [0], [1], [0, 0, 1, 1], [], []>} : vector<8x8xbf16>, vector<8x16xbf16>, vector<8x16xf32> -> vector<8x16xf32>
    %22 = vector.extract_strided_slice %1 {offsets = [0, 16], sizes = [8, 16], strides = [1, 1]} : vector<8x32xbf16> to vector<8x16xbf16>
    %23 = vector.extract_strided_slice %3 {offsets = [0, 16], sizes = [8, 16], strides = [1, 1]} : vector<8x32xbf16> to vector<8x16xbf16>
    %24 = vector.extract_strided_slice %5 {offsets = [0, 16], sizes = [8, 16], strides = [1, 1]} : vector<8x32xbf16> to vector<8x16xbf16>
    %cst_9 = arith.constant dense<0.000000e+00> : vector<8x8xf32>
    %25 = tpu.matmul %22, %23, %cst_9 {dimension_numbers = #tpu.dot_dimension_numbers<[1], [1], [0], [0], [0, 0, 1, 0], [], []>} : vector<8x16xbf16>, vector<8x16xbf16>, vector<8x8xf32> -> vector<8x8xf32>
    %cst_10 = arith.constant dense<0xFF800000> : vector<8xf32>
    %26 = vector.multi_reduction <maximumf>, %25, %cst_10 [1] : vector<8x8xf32> to vector<8xf32>
    %27 = vector.shape_cast %26 : vector<8xf32> to vector<8x1xf32>
    %28 = vector.broadcast %27 : vector<8x1xf32> to vector<8x8xf32>
    %29 = arith.subf %25, %28 : vector<8x8xf32>
    %30 = math.exp %29 : vector<8x8xf32>
    %cst_11 = arith.constant dense<0.000000e+00> : vector<8xf32>
    %31 = vector.multi_reduction <add>, %30, %cst_11 [1] : vector<8x8xf32> to vector<8xf32>
    %32 = vector.shape_cast %31 : vector<8xf32> to vector<8x1xf32>
    %33 = tpu.reciprocal %32 {approx = true} : vector<8x1xf32> -> vector<8x1xf32>
    %34 = vector.broadcast %33 : vector<8x1xf32> to vector<8x8xf32>
    %35 = arith.mulf %30, %34 : vector<8x8xf32>
    %36 = arith.truncf %35 : vector<8x8xf32> to vector<8x8xbf16>
    %cst_12 = arith.constant dense<0.000000e+00> : vector<8x16xf32>
    %37 = tpu.matmul %36, %24, %cst_12 {dimension_numbers = #tpu.dot_dimension_numbers<[1], [0], [0], [1], [0, 0, 1, 1], [], []>} : vector<8x8xbf16>, vector<8x16xbf16>, vector<8x16xf32> -> vector<8x16xf32>
    %38 = tpu.concatenate %21, %37 in 1 : vector<8x16xf32>, vector<8x16xf32> -> vector<8x32xf32>
    %39 = arith.truncf %38 : vector<8x32xf32> to vector<8x32xbf16>
    %c0_13 = arith.constant 0 : index
    %c0_14 = arith.constant 0 : index
    %c0_15 = arith.constant 0 : index
    %40 = vector.load %arg3[%c0_13, %c0_14, %c0_15] : memref<1x8x32xbf16, #tpu.memory_space<vmem>>, vector<1x8x32xbf16>
    %41 = vector.shape_cast %40 : vector<1x8x32xbf16> to vector<8x32xbf16>
    %42 = vector.shape_cast %39 : vector<8x32xbf16> to vector<1x8x32xbf16>
    tpu.vector_store %arg3[%c0_13, %c0_14, %c0_15], %42 {strides = array<i32>} : memref<1x8x32xbf16, #tpu.memory_space<vmem>>, vector<1x8x32xbf16>,
    return
  }
  func.func @transform_0(%arg0: i32, %arg1: i32) -> (i32, i32, i32) {
    %c0_i32 = arith.constant 0 : i32
    %c0_i32_0 = arith.constant 0 : i32
    %c0_i32_1 = arith.constant 0 : i32
    return %arg0, %c0_i32, %c0_i32_0 : i32, i32, i32
  }
  func.func @transform_1(%arg0: i32, %arg1: i32) -> (i32, i32, i32) {
    %c0_i32 = arith.constant 0 : i32
    %c0_i32_0 = arith.constant 0 : i32
    return %arg0, %arg1, %c0_i32 : i32, i32, i32
  }
}

module attributes {stable_mosaic.version = 11 : i64} {
  func.func @_matmul_bias_kernel(%arg0: i32, %arg1: i32, %arg2: memref<16x32xbf16, #tpu.memory_space<vmem>>, %arg3: memref<32x32xbf16, #tpu.memory_space<vmem>>, %arg4: memref<1x32xf32, #tpu.memory_space<vmem>>, %arg5: memref<16x32xf32, #tpu.memory_space<vmem>>) attributes {dimension_semantics = [#tpu.dimension_semantics<parallel>, #tpu.dimension_semantics<parallel>], iteration_bounds = array<i64: 1, 1>, scalar_prefetch = 0 : i64, scratch_operands = 0 : i64, tpu.core_type = #tpu.core_type<tc>, window_params = [{transform_indices = @transform_0, window_bounds = array<i64: 16, 32>}, {transform_indices = @transform_1, window_bounds = array<i64: 32, 32>}, {transform_indices = @transform_2, window_bounds = array<i64: 1, 32>}, {transform_indices = @transform_3, window_bounds = array<i64: 16, 32>}]} {
    %c0 = arith.constant 0 : index
    %c0_0 = arith.constant 0 : index
    %0 = vector.load %arg2[%c0, %c0_0] : memref<16x32xbf16, #tpu.memory_space<vmem>>, vector<16x32xbf16>
    %c0_1 = arith.constant 0 : index
    %c0_2 = arith.constant 0 : index
    %1 = vector.load %arg3[%c0_1, %c0_2] : memref<32x32xbf16, #tpu.memory_space<vmem>>, vector<32x32xbf16>
    %cst = arith.constant dense<0.000000e+00> : vector<16x32xf32>
    %2 = tpu.matmul %0, %1, %cst {dimension_numbers = #tpu.dot_dimension_numbers<[1], [0], [0], [1], [0, 0, 1, 1], [], []>} : vector<16x32xbf16>, vector<32x32xbf16>, vector<16x32xf32> -> vector<16x32xf32>
    %c0_3 = arith.constant 0 : index
    %c0_4 = arith.constant 0 : index
    %3 = vector.load %arg4[%c0_3, %c0_4] : memref<1x32xf32, #tpu.memory_space<vmem>>, vector<1x32xf32>
    %4 = vector.broadcast %3 : vector<1x32xf32> to vector<16x32xf32>
    %5 = arith.addf %2, %4 : vector<16x32xf32>
    %c0_5 = arith.constant 0 : index
    %c0_6 = arith.constant 0 : index
    %6 = vector.load %arg5[%c0_5, %c0_6] : memref<16x32xf32, #tpu.memory_space<vmem>>, vector<16x32xf32>
    tpu.vector_store %arg5[%c0_5, %c0_6], %5 {strides = array<i32>} : memref<16x32xf32, #tpu.memory_space<vmem>>, vector<16x32xf32>,
    return
  }
  func.func @transform_0(%arg0: i32, %arg1: i32) -> (i32, i32) {
    %c0_i32 = arith.constant 0 : i32
    %c0_i32_0 = arith.constant 0 : i32
    return %arg0, %c0_i32 : i32, i32
  }
  func.func @transform_1(%arg0: i32, %arg1: i32) -> (i32, i32) {
    %c0_i32 = arith.constant 0 : i32
    %c0_i32_0 = arith.constant 0 : i32
    return %c0_i32, %arg1 : i32, i32
  }
  func.func @transform_2(%arg0: i32, %arg1: i32) -> (i32, i32) {
    %c0_i32 = arith.constant 0 : i32
    %c0_i32_0 = arith.constant 0 : i32
    return %c0_i32, %arg1 : i32, i32
  }
  func.func @transform_3(%arg0: i32, %arg1: i32) -> (i32, i32) {
    %c0_i32 = arith.constant 0 : i32
    return %arg0, %arg1 : i32, i32
  }
}

</mosaic_0001>

<bundles_post_ra>
// kernel: multi_head_attention.5
= control target key start
LH: loop header
LB: loop body
LE: loop exit
PB: predicated region body
PF: predicated region fallthrough
CT: control target
= control target key end

     0   :  { %8 = vsyncpa [#allocation3], 0  ;;  %s211_s0 = inlined_call_operand.vmem [shape: bf16[16,32], index: 0, kind: input, shape index: {}]   ;;  %s212_s1 = inlined_call_operand.hbm [shape: bf16[32,32], index: 1, kind: input, shape index: {}]   ;;  %s213_s2 = inlined_call_operand.vmem [shape: f32[1,32], index: 2, kind: input, shape index: {}]   ;;  %s214_s3 = inlined_call_operand.hbm [shape: f32[16,32], index: 3, kind: output, shape index: {}]  }
   0x1   :  { %9 = vsyncpa [#allocation4], 0  ;;  %s16_s14 = sshll.u32 %s212_s1, 4  ;;  %s173_s15 = smov [#allocation2]   ;;  %s17_s14 = int_to_ptr.hbm [resolvable:$true] %s16_s14 }
   0x2   :  { %s18_s16 = sshll.u32 %s173_s15, 4  ;;  %s174_s17 = smov 64   ;;  %s19_s16 = int_to_ptr.vmem [resolvable:$true] %s18_s16 }
   0x3   :  { %s175_s18 = smov 4  }
   0x4   :  { %24 = dma.hbm_to_vmem [thread:$0]  %s17_s14, 256, %s19_s16, [#allocation3], %s174_s17, %s174_s17, %s175_s18  }
   0x5   :  { %169 = dma.done.wait [#allocation3], 256  }
   0x6   :  { %170 = vsyncadd [#allocation3], 4294967040  ;;  %v113_v0 = vld [vmem:[#allocation2 + $0x8] sm:$0xff]  ;;  %v112_v1 = vld [vmem:[#allocation2] sm:$0xff]  ;;  %vm59_vm0 = vcmask 261120   ;;  %s176_s22 = smov [#allocation5]  }
   0x7   :  { %69 = vmatpush.bf16.msra.mxu0 %v113_v0  ;;  %v111_v2 = vld [vmem:[%s211_s0] sm:$0xff]  ;;  %s83_s23 = sshll.u32 %s176_s22, 4  ;;  %s85_s26 = sshll.u32 %s214_s3, 4  ;;  %s84_s23 = int_to_ptr.vmem [resolvable:$true] %s83_s23  ;;  %s86_s26 = int_to_ptr.hbm [resolvable:$true] %s85_s26 }
   0x8   :  { %v120_v3 = vld [vmem:[%s213_s2] ss:$0 sm:$0xff]  ;;  %s177_s0 = smov 128   ;;  %s178_s27 = smov 8  }
   0xb   :  { %70 = vmatpush.bf16.msra.mxu0 %v112_v1 }
   0xe   :  { %110 = vmatmul.msk.bf16.vlgmr.msra.gmra.mxu0 %vm59_vm0, %v111_v2 }
  0x8b   :  { %v72_v4 = vpop.f32.mrf.mxu0 }
  0x8c   :  { %v73_v5 = vadd.f32 %v120_v3, %v72_v4 }
  0x8e   :  { %77 = vst.msk [vmem:[#allocation5] sm:$0xff] %vm59_vm0, %v73_v5 }
  0x93   :  { %v74_v6 = vpop.f32.mrf.mxu0 }
  0x94   :  { %v75_v7 = vadd.f32 %v120_v3, %v74_v6 }
  0x96   :  { %78 = vst.msk [vmem:[#allocation5 + $0x8] sm:$0xff] %vm59_vm0, %v75_v7 }
  0x97   :  { %91 = dma.vmem_to_hbm [thread:$0]  %s84_s23, 256, %s86_s26, [#allocation4], %s177_s0, %s177_s0, %s178_s27  }
  0x98   :  { %171 = dma.done.wait [#allocation4], 256  }
  0x99   :  { %172 = vsyncadd [#allocation4], 4294967040 }
  0x9a   :  { %96 = vsyncpa [#allocation3], 1 }
  0x9b   :  { %97 = vsyncpa [#allocation4], 1 }

// kernel: multi_head_attention.3
= control target key start
LH: loop header
LB: loop body
LE: loop exit
PB: predicated region body
PF: predicated region fallthrough
CT: control target
= control target key end

     0   :  { %vm35_vm0 = vcmask 261120   ;;  %vm55_vm1 = vcmask 781312   ;;  %s108_s1 = inlined_call_operand.vmem [shape: bf16[32,96], index: 1, kind: input, shape index: {}]   ;;  %s109_s0 = inlined_call_operand.vmem [shape: bf16[16,32], index: 0, kind: input, shape index: {}]   ;;  %s110_s2 = inlined_call_operand.vmem [shape: bf16[16,96], index: 2, kind: output, shape index: {}]  }
   0x1   :  { %v77_v0 = vld [vmem:[%s108_s1 + $0x8] sm:$0xff]  ;;  %v76_v1 = vld [vmem:[%s108_s1] sm:$0xff] }
   0x2   :  { %45 = vmatpush.bf16.msra.mxu0 %v77_v0  ;;  %v75_v2 = vld [vmem:[%s109_s0] sm:$0xff] }
   0x6   :  { %46 = vmatpush.bf16.msra.mxu0 %v76_v1 }
   0x9   :  { %74 = vmatmul.msk.bf16.vlgmr.msra.gmra.mxu0 %vm35_vm0, %v75_v2 }
  0x86   :  { %v48_v3 = vpop.f32.mrf.mxu0 }
  0x87   :  { %v53_v4 = vpack.c.bf16 %v48_v3, %v48_v3 }
  0x89   :  { %56 = vst.msk [vmem:[%s110_s2] sm:$0xf] %vm55_vm1, %v53_v4 }
  0x8e   :  { %v50_v5 = vpop.f32.mrf.mxu0 }
  0x8f   :  { %v54_v6 = vpack.c.bf16 %v50_v5, %v50_v5 }
  0x91   :  { %57 = vst.msk [vmem:[%s110_s2 + $0x4] sm:$0xf] %vm55_vm1, %v54_v6 }

// kernel: multi_head_attention.4
= control target key start
LH: loop header
LB: loop body
LE: loop exit
PB: predicated region body
PF: predicated region fallthrough
CT: control target
= control target key end

     0   :  { %s420_s6 = smov 0   ;;  %s422_s7 = smov 0   ;;  %s471_s0 = inlined_call_operand.vmem [shape: bf16[2,8,96], index: 0, kind: input, shape index: {}]   ;;  %s472_s1 = inlined_call_operand.vmem [shape: bf16[2,8,32], index: 1, kind: output, shape index: {}]  }
   0x1   :  { %s424_s8 = smov 0  }
   0x2 LB: > { %s23_s9 = sadd.s32 1, %s398_s7  ;;  %p333_p0 = scmp.ge.s32.totalorder %s402_s8, 1  ;;  %s402_s8 = sphi %s424_s8, %s11_s8   ;;  %s398_s7 = sphi %s422_s7, %s474_s7   ;;  %s394_s6 = sphi %s420_s6, %s473_s6  }
   0x3   : > { %p25_p1 = scmp.ge.s32.totalorder %s23_s9, 2  ;;  %p100_p2 = scmp.lt.s32.totalorder %s402_s8, 3 }
   0x5   : > { %s476_s9 = smov (%p25_p1, %s23_s9), 0  ;;  %p101_p3 = pnand %p333_p0, %p100_p2 }
   0x6   : > { %p121_p4 = scmp.lt.s32.totalorder (!%p101_p3), %s394_s6, 1  ;;  %s404_s14 = smov (!%p101_p3), 96  }
   0x7   : > { %104 = sbr.rel (%p101_p3) target bundleno = 758 (0x2f6), region = 24  ;;  %s405_s15 = smov (!%p101_p3), 80  }
   0x8   : > { %s406_s16 = smov (!%p101_p3), 112   ;;  %s407_s17 = smov (!%p101_p3), 48  }
   0x9   : > { %s408_s18 = smov (!%p101_p3), 64   ;;  %s409_s19 = smov (!%p101_p3), 16  }
   0xc   : > { %s478_s6 = smov (!%p121_p4, %s394_s6), 1  ;;  %vm139_vm0 = vcmask 130048   ;;  %vm159_vm1 = vcmask 64512   ;;  %vm177_vm2 = vcmask 1043456   ;;  %vm256_vm3 = vcmask 257024  }
   0xd   : > { %s334_s10 = sshll.u32 %s478_s6, 2 }
   0xe   : > { %s124_s13 = scalar_lea.vmem %s471_s0, %s334_s10  ;;  %s131_s22 = scalar_lea.vmem %s472_s1, %s334_s10 }
   0xf   : > { %v133_v0 = vld [vmem:[%s124_s13] sm:$0xf] }
  0x10   : > { %v135_v1 = vunpack.c.l.b16 %v133_v0 }
  0x12   : > { %v136_v2 = vpack.c.b16 %v135_v1, %v135_v1 }
  0x14   : > { %137 = vrot.lane.b32.xlu1 %v136_v2, %s404_s14  ;;  %196 = vrot.lane.b32.xlu0 %v136_v2, %s405_s15 }
  0x1c   : > { %194 = vrot.lane.b32.xlu0 %v136_v2, %s406_s16 }
  0x24   : > { %229 = vrot.lane.b32.xlu0 %v136_v2, %s407_s17 }
  0x2c   : > { %172 = vrot.lane.b32.xlu0 %v136_v2, %s408_s18 }
  0x86   : > { %v138_v3 = vpop.permute.xlu1 %137  ;;  %v197_v4 = vpop.permute.xlu0 %196 }
  0x87   : > { %v144_v5 = vsel %vm139_vm0, %v138_v3, 0  ;;  %v202_v6 = vsel %vm139_vm0, %v197_v4, 0 }
  0x88   : > { %153 = vmatpush.bf16.xpose.msra.mxu0 %v144_v5  ;;  %211 = vmatpush.bf16.xpose.msra.mxu2 %v202_v6 }
  0x8e   : > { %v195_v7 = vpop.permute.xlu0 %194 }
  0x8f   : > { %336 = vmatmul.msk.bf16.vlgmr.msra.gmra.mxu0 %vm139_vm0, %v133_v0  ;;  %338 = vmatmul.msk.bf16.vlgmr.msra.gmra.mxu2 %vm139_vm0, %v195_v7 }
  0x96   : > { %v230_v24 = vpop.permute.xlu0 %229 }
  0x97   : > { %v235_v25 = vsel %vm177_vm2, %v230_v24, 0 }
  0x98   : > { %244 = vmatpush.bf16.msra.mxu3 %v235_v25 }
  0x9e   : > { %v173_v26 = vpop.permute.xlu0 %172 }
  0x9f   : > { %v179_v27 = vsel %vm177_vm2, %v173_v26, 0 }
  0xa0   : > { %188 = vmatpush.bf16.msra.mxu1 %v179_v27 }
 0x10c   : > { %v155_v8 = vpop.f32.mrf.mxu0 }
 0x10d   : > { %v160_v9 = vsel %vm159_vm1, %v155_v8, -inf }
 0x10e   : > { %161 = vmax.xlane.f32.xlu2 %v160_v9 }
 0x112   : > { %v213_v10 = vpop.f32.mrf.mxu2 }
 0x113   : > { %v217_v11 = vsel %vm159_vm1, %v213_v10, -inf }
 0x114   : > { %218 = vmax.xlane.f32.xlu1 %v217_v11  ;;  %v157_v12 = vpop.f32.mrf.mxu0 }
 0x11a   : > { %v215_v13 = vpop.f32.mrf.mxu2 }
 0x181   : > { %v162_v14 = vpop.xlane.xlu2 %161 }
 0x182   : > { %v163_v17 = vsub.f32 %v155_v8, %v162_v14 }
 0x184   : > { %v164_v19 = vmul.f32 1.442695, %v163_v17 }
 0x187   : > { %v219_v15 = vpop.xlane.xlu1 %218 }
 0x188   : > { %v220_v16 = vsub.f32 %v213_v10, %v219_v15 }
 0x18a   : > { %v221_v18 = vmul.f32 1.442695, %v220_v16 }
 0x18c   : > { %372 = vpow2.f32 %v221_v18 }
 0x18d   : > { %374 = vpow2.f32 %v164_v19 }
 0x192   : > { %v373_v20 = vpop.eup %372 }
 0x193   : > { %v223_v21 = vsel %vm159_vm1, %v373_v20, 0.0  ;;  %v375_v22 = vpop.eup %374 }
 0x194   : > { %224 = vadd.xlane.f32.xlu2 %v223_v21  ;;  %v166_v23 = vsel %vm159_vm1, %v375_v22, 0.0 }
 0x19c   : > { %167 = vadd.xlane.f32.xlu2 %v166_v23 }
 0x207   : > { %v225_v28 = vpop.xlane.xlu2 %224 }
 0x208   : > { %376 = vrcp.f32 %v225_v28 }
 0x20e   : > { %v377_v29 = vpop.eup %376 }
 0x20f   : > { %v168_v30 = vpop.xlane.xlu2 %167  ;;  %v227_v31 = vmul.f32 %v377_v29, %v373_v20 }
 0x210   : > { %378 = vrcp.f32 %v168_v30 }
 0x211   : > { %v228_v32 = vpack.c.bf16 %v227_v31, %v227_v31 }
 0x213   : > { %339 = vmatmul.msk.bf16.vlgmr.msra.gmra.mxu3 %vm159_vm1, %v228_v32 }
 0x216   : > { %v379_v33 = vpop.eup %378 }
 0x217   : > { %v170_v34 = vmul.f32 %v379_v33, %v375_v22 }
 0x219   : > { %v171_v35 = vpack.c.bf16 %v170_v34, %v170_v34 }
 0x21b   : > { %337 = vmatmul.msk.bf16.vlgmr.msra.gmra.mxu1 %vm159_vm1, %v171_v35 }
 0x296   : > { %v246_v36 = vpop.f32.mrf.mxu3 }
 0x297   : > { %251 = vrot.lane.b32.xlu2 %v246_v36, %s409_s19 }
 0x298   : > { %v190_v37 = vpop.f32.mrf.mxu1 }
 0x29e   : > { %v248_v38 = vpop.f32.mrf.mxu3 }
 0x2a0   : > { %v192_v39 = vpop.f32.mrf.mxu1 }
 0x2f1   : > { %v252_v40 = vpop.permute.xlu2 %251 }
 0x2f2   : > { %v254_v41 = vsel %vm139_vm0, %v190_v37, %v252_v40 }
 0x2f3   : > { %v255_v42 = vpack.c.bf16 %v254_v41, %v254_v41 }
 0x2f5   : > { %257 = vst.msk [vmem:[%s131_s22] sm:$0xf] %vm256_vm3, %v255_v42 }
 0x2f6 PF: > { %s11_s8 = sadd.s32 1, %s402_s8   ;;  %s473_s6 = smov %s398_s7 }
 0x2f7   : > { %p8_p5 = scmp.ge.s32.totalorder %s11_s8, 4   ;;  %s474_s7 = smov %s476_s9 }
 0x2f9   :  { %10 = sbr.rel (!%p8_p5) target bundleno = 2 (0x2), region = 54 }

</bundles_post_ra>
